<compile_context>
chip_gen: v7x
topology: tpu7x:2x2x1
jax: 0.10.0
libtpu: 0.0.40
codegen_flags: <defaults>
</compile_context>

<pallas_src>
import functools

import jax
import jax.numpy as jnp
from jax import lax
from jax.experimental import pallas as pl
from jax.experimental.pallas import tpu as pltpu


def lstm_kernel(ids_ref, emb_ref, wih_ref, whh_ref, b_ref, wout_ref, bout_ref,
                out_ref, hs_ref, *, seq_len, batch):
    """Whole forward pass (embed -> LSTM -> linear) in a single program.

    ids_ref  : (T*B, 1) int32  time-major flattened token ids
    emb_ref  : (V, E)   bf16   embedding table
    wih_ref  : (E, 4H)  bf16   input->gates weights (transposed weight_ih)
    whh_ref  : (H, 4H)  bf16   hidden->gates weights (transposed weight_hh)
    b_ref    : (1, 4H)  f32    bias_ih + bias_hh
    wout_ref : (H, O)   bf16   linear weight (transposed)
    bout_ref : (1, O)   f32    linear bias
    out_ref  : (T*B, O) f32    time-major flattened outputs
    hs_ref   : (T*B, H) f32    VMEM scratch for hidden states
    """
    T, B = seq_len, batch
    TB = T * B
    H = whh_ref.shape[0]
    V = emb_ref.shape[0]

    # --- Embedding gather as a one-hot MXU matmul (exact, no dynamic indexing).
    ids = ids_ref[...]                                                 # (T*B, 1)
    iota_v = lax.broadcasted_iota(jnp.int32, (TB, V), 1)
    onehot = (ids == iota_v).astype(jnp.bfloat16)                      # (T*B, V)
    xemb = jnp.dot(onehot, emb_ref[...],
                   preferred_element_type=jnp.float32)                 # (T*B, E)

    # --- Input projection for ALL timesteps as one MXU matmul (off the serial
    # recurrence). bf16 operands, f32 accumulation.
    xg = jnp.dot(xemb.astype(jnp.bfloat16), wih_ref[...],
                 preferred_element_type=jnp.float32) + b_ref[...]      # (T*B, 4H)

    whh = whh_ref[...]                                                 # load once

    h = jnp.zeros((B, H), jnp.float32)
    c = jnp.zeros((B, H), jnp.float32)

    # --- Serial recurrence, statically unrolled (T fixed & small).
    for t in range(T):
        gates = xg[t * B:(t + 1) * B, :] + jnp.dot(
            h.astype(whh.dtype), whh, preferred_element_type=jnp.float32)  # (B, 4H)
        # Two full-vreg EUP passes; pick gate blocks afterwards.
        sig = jax.nn.sigmoid(gates)
        tnh = jnp.tanh(gates)
        i_g = sig[:, 0 * H:1 * H]
        f_g = sig[:, 1 * H:2 * H]
        g_g = tnh[:, 2 * H:3 * H]
        o_g = sig[:, 3 * H:4 * H]
        c = f_g * c + i_g * g_g
        h = o_g * jnp.tanh(c)
        hs_ref[t * B:(t + 1) * B, :] = h

    # --- Output projection hoisted out of the loop: one matmul, one store.
    out_ref[...] = (jnp.dot(hs_ref[...].astype(wout_ref.dtype), wout_ref[...],
                            preferred_element_type=jnp.float32)
                    + bout_ref[...]).astype(out_ref.dtype)


def simple_lstm_forward(x_tokens, params):
    """x_tokens: (B, T) int32 token ids. Returns (B, T, O) float32."""
    emb_table = params["embedding"]       # (V, E)
    wih = params["wih"]                   # (E, 4H)
    whh = params["whh"]                   # (H, 4H)
    b = params["b"]                       # (1, 4H)
    wout = params["wout"]                 # (H, O)
    bout = params["bout"]                 # (1, O)

    B, T = x_tokens.shape
    H = whh.shape[0]
    O = wout.shape[1]

    # Time-major flattened token ids (tiny int transpose; gather itself is
    # done inside the kernel as a one-hot matmul).
    ids_tm = x_tokens.T.reshape(T * B, 1).astype(jnp.int32)

    vmem = pl.BlockSpec(memory_space=pltpu.MemorySpace.VMEM)
    out_flat = pl.pallas_call(
        functools.partial(lstm_kernel, seq_len=T, batch=B),
        out_shape=jax.ShapeDtypeStruct((T * B, O), jnp.float32),
        in_specs=[vmem] * 7,
        out_specs=vmem,
        scratch_shapes=[pltpu.VMEM((T * B, H), jnp.float32)],
    )(ids_tm,
      emb_table.astype(jnp.bfloat16),
      wih.astype(jnp.bfloat16),
      whh.astype(jnp.bfloat16),
      b,
      wout.astype(jnp.bfloat16),
      bout)

    return jnp.transpose(out_flat.reshape(T, B, O), (1, 0, 2))    # (B, T, O)


def reference_forward(x_tokens, params):
    """Pure-JAX f32 reference for correctness checking."""
    emb = jnp.take(params["embedding"], x_tokens, axis=0)         # (B, T, E)
    B, T, _ = emb.shape
    H = params["whh"].shape[0]

    def step(carry, x_t):
        h, c = carry
        gates = x_t @ params["wih"] + h @ params["whh"] + params["b"]
        i_g = jax.nn.sigmoid(gates[:, 0 * H:1 * H])
        f_g = jax.nn.sigmoid(gates[:, 1 * H:2 * H])
        g_g = jnp.tanh(gates[:, 2 * H:3 * H])
        o_g = jax.nn.sigmoid(gates[:, 3 * H:4 * H])
        c = f_g * c + i_g * g_g
        h = o_g * jnp.tanh(c)
        return (h, c), h

    h0 = jnp.zeros((B, H), jnp.float32)
    c0 = jnp.zeros((B, H), jnp.float32)
    _, hs = lax.scan(step, (h0, c0), jnp.transpose(emb, (1, 0, 2)))
    out = hs @ params["wout"] + params["bout"]                    # (T, B, O)
    return jnp.transpose(out, (1, 0, 2))


def init_params(key, vocab=64, embed=32, hidden=32, out_dim=16):
    ks = jax.random.split(key, 6)
    scale = 0.1
    return {
        "embedding": scale * jax.random.normal(ks[0], (vocab, embed), jnp.float32),
        "wih": scale * jax.random.normal(ks[1], (embed, 4 * hidden), jnp.float32),
        "whh": scale * jax.random.normal(ks[2], (hidden, 4 * hidden), jnp.float32),
        "b": scale * jax.random.normal(ks[3], (1, 4 * hidden), jnp.float32),
        "wout": scale * jax.random.normal(ks[4], (hidden, out_dim), jnp.float32),
        "bout": scale * jax.random.normal(ks[5], (1, out_dim), jnp.float32),
    }


if __name__ == "__main__":
    key = jax.random.PRNGKey(0)
    k_param, k_x = jax.random.split(key)

    B, T, V = 2, 8, 64
    params = init_params(k_param, vocab=V, embed=32, hidden=32, out_dim=16)
    x_tokens = jax.random.randint(k_x, (B, T), 0, V, dtype=jnp.int32)

    fwd = jax.jit(simple_lstm_forward)
    out = jax.block_until_ready(fwd(x_tokens, params))

    ref = jax.block_until_ready(reference_forward(x_tokens, params))
    assert out.shape == (B, T, 16)
    # bf16 MXU operands with f32 accumulation -> slightly looser tolerance.
    assert jnp.allclose(out, ref, rtol=5e-2, atol=5e-3), "mismatch vs reference"

    print("KERNEL_OK")
</pallas_src>

<mosaic_0001>
module attributes {stable_mosaic.version = 11 : i64} {
  func.func @lstm_kernel(%arg0: memref<16x1xi32, #tpu.memory_space<vmem>>, %arg1: memref<64x32xbf16, #tpu.memory_space<vmem>>, %arg2: memref<32x128xbf16, #tpu.memory_space<vmem>>, %arg3: memref<32x128xbf16, #tpu.memory_space<vmem>>, %arg4: memref<1x128xf32, #tpu.memory_space<vmem>>, %arg5: memref<32x16xbf16, #tpu.memory_space<vmem>>, %arg6: memref<1x16xf32, #tpu.memory_space<vmem>>, %arg7: memref<16x16xf32, #tpu.memory_space<vmem>>, %arg8: memref<16x32xf32, #tpu.memory_space<vmem>>) attributes {dimension_semantics = [], scalar_prefetch = 0 : i64, scratch_operands = 1 : i64, tpu.core_type = #tpu.core_type<tc>} {
    %c0 = arith.constant 0 : index
    %c0_0 = arith.constant 0 : index
    %0 = vector.load %arg0[%c0, %c0_0] : memref<16x1xi32, #tpu.memory_space<vmem>>, vector<16x1xi32>
    %1 = tpu.iota {dimensions = array<i32: 1>} : vector<16x64xi32>
    %2 = vector.broadcast %0 : vector<16x1xi32> to vector<16x64xi32>
    %3 = arith.cmpi eq, %2, %1 : vector<16x64xi32>
    %4 = arith.extui %3 : vector<16x64xi1> to vector<16x64xi32>
    %5 = arith.sitofp %4 : vector<16x64xi32> to vector<16x64xf32>
    %6 = arith.truncf %5 : vector<16x64xf32> to vector<16x64xbf16>
    %c0_1 = arith.constant 0 : index
    %c0_2 = arith.constant 0 : index
    %7 = vector.load %arg1[%c0_1, %c0_2] : memref<64x32xbf16, #tpu.memory_space<vmem>>, vector<64x32xbf16>
    %cst = arith.constant dense<0.000000e+00> : vector<16x32xf32>
    %8 = tpu.matmul %6, %7, %cst {dimension_numbers = #tpu.dot_dimension_numbers<[1], [0], [0], [1], [0, 0, 1, 1], [], []>} : vector<16x64xbf16>, vector<64x32xbf16>, vector<16x32xf32> -> vector<16x32xf32>
    %9 = arith.truncf %8 : vector<16x32xf32> to vector<16x32xbf16>
    %c0_3 = arith.constant 0 : index
    %c0_4 = arith.constant 0 : index
    %10 = vector.load %arg2[%c0_3, %c0_4] : memref<32x128xbf16, #tpu.memory_space<vmem>>, vector<32x128xbf16>
    %cst_5 = arith.constant dense<0.000000e+00> : vector<16x128xf32>
    %11 = tpu.matmul %9, %10, %cst_5 {dimension_numbers = #tpu.dot_dimension_numbers<[1], [0], [0], [1], [0, 0, 1, 1], [], []>} : vector<16x32xbf16>, vector<32x128xbf16>, vector<16x128xf32> -> vector<16x128xf32>
    %c0_6 = arith.constant 0 : index
    %c0_7 = arith.constant 0 : index
    %12 = vector.load %arg4[%c0_6, %c0_7] : memref<1x128xf32, #tpu.memory_space<vmem>>, vector<1x128xf32>
    %13 = vector.broadcast %12 : vector<1x128xf32> to vector<16x128xf32>
    %14 = arith.addf %11, %13 : vector<16x128xf32>
    %c0_8 = arith.constant 0 : index
    %c0_9 = arith.constant 0 : index
    %15 = vector.load %arg3[%c0_8, %c0_9] : memref<32x128xbf16, #tpu.memory_space<vmem>>, vector<32x128xbf16>
    %cst_10 = arith.constant 0.000000e+00 : f32
    %16 = vector.broadcast %cst_10 : f32 to vector<2x32xf32>
    %cst_11 = arith.constant 0.000000e+00 : f32
    %17 = vector.broadcast %cst_11 : f32 to vector<2x32xf32>
    %18 = vector.extract_strided_slice %14 {offsets = [0, 0], sizes = [2, 128], strides = [1, 1]} : vector<16x128xf32> to vector<2x128xf32>
    %19 = arith.truncf %16 : vector<2x32xf32> to vector<2x32xbf16>
    %cst_12 = arith.constant dense<0.000000e+00> : vector<2x128xf32>
    %20 = tpu.matmul %19, %15, %cst_12 {dimension_numbers = #tpu.dot_dimension_numbers<[1], [0], [0], [1], [0, 0, 1, 1], [], []>} : vector<2x32xbf16>, vector<32x128xbf16>, vector<2x128xf32> -> vector<2x128xf32>
    %21 = arith.addf %18, %20 : vector<2x128xf32>
    %22 = arith.negf %21 : vector<2x128xf32>
    %23 = math.exp %22 : vector<2x128xf32>
    %cst_13 = arith.constant 1.000000e+00 : f32
    %24 = vector.broadcast %cst_13 : f32 to vector<2x128xf32>
    %25 = arith.addf %24, %23 : vector<2x128xf32>
    %26 = arith.divf %24, %25 : vector<2x128xf32>
    %27 = math.tanh %21 : vector<2x128xf32>
    %28 = vector.extract_strided_slice %26 {offsets = [0, 0], sizes = [2, 32], strides = [1, 1]} : vector<2x128xf32> to vector<2x32xf32>
    %29 = vector.extract_strided_slice %26 {offsets = [0, 32], sizes = [2, 32], strides = [1, 1]} : vector<2x128xf32> to vector<2x32xf32>
    %30 = vector.extract_strided_slice %27 {offsets = [0, 64], sizes = [2, 32], strides = [1, 1]} : vector<2x128xf32> to vector<2x32xf32>
    %31 = vector.extract_strided_slice %26 {offsets = [0, 96], sizes = [2, 32], strides = [1, 1]} : vector<2x128xf32> to vector<2x32xf32>
    %32 = arith.mulf %29, %17 : vector<2x32xf32>
    %33 = arith.mulf %28, %30 : vector<2x32xf32>
    %34 = arith.addf %32, %33 : vector<2x32xf32>
    %35 = math.tanh %34 : vector<2x32xf32>
    %36 = arith.mulf %31, %35 : vector<2x32xf32>
    %c0_14 = arith.constant 0 : index
    %c0_15 = arith.constant 0 : index
    %37 = vector.load %arg8[%c0_14, %c0_15] : memref<16x32xf32, #tpu.memory_space<vmem>>, vector<2x32xf32>
    tpu.vector_store %arg8[%c0_14, %c0_15], %36 {strides = array<i32>} : memref<16x32xf32, #tpu.memory_space<vmem>>, vector<2x32xf32>,
    %38 = vector.extract_strided_slice %14 {offsets = [2, 0], sizes = [2, 128], strides = [1, 1]} : vector<16x128xf32> to vector<2x128xf32>
    %39 = arith.truncf %36 : vector<2x32xf32> to vector<2x32xbf16>
    %cst_16 = arith.constant dense<0.000000e+00> : vector<2x128xf32>
    %40 = tpu.matmul %39, %15, %cst_16 {dimension_numbers = #tpu.dot_dimension_numbers<[1], [0], [0], [1], [0, 0, 1, 1], [], []>} : vector<2x32xbf16>, vector<32x128xbf16>, vector<2x128xf32> -> vector<2x128xf32>
    %41 = arith.addf %38, %40 : vector<2x128xf32>
    %42 = arith.negf %41 : vector<2x128xf32>
    %43 = math.exp %42 : vector<2x128xf32>
    %cst_17 = arith.constant 1.000000e+00 : f32
    %44 = vector.broadcast %cst_17 : f32 to vector<2x128xf32>
    %45 = arith.addf %44, %43 : vector<2x128xf32>
    %46 = arith.divf %44, %45 : vector<2x128xf32>
    %47 = math.tanh %41 : vector<2x128xf32>
    %48 = vector.extract_strided_slice %46 {offsets = [0, 0], sizes = [2, 32], strides = [1, 1]} : vector<2x128xf32> to vector<2x32xf32>
    %49 = vector.extract_strided_slice %46 {offsets = [0, 32], sizes = [2, 32], strides = [1, 1]} : vector<2x128xf32> to vector<2x32xf32>
    %50 = vector.extract_strided_slice %47 {offsets = [0, 64], sizes = [2, 32], strides = [1, 1]} : vector<2x128xf32> to vector<2x32xf32>
    %51 = vector.extract_strided_slice %46 {offsets = [0, 96], sizes = [2, 32], strides = [1, 1]} : vector<2x128xf32> to vector<2x32xf32>
    %52 = arith.mulf %49, %34 : vector<2x32xf32>
    %53 = arith.mulf %48, %50 : vector<2x32xf32>
    %54 = arith.addf %52, %53 : vector<2x32xf32>
    %55 = math.tanh %54 : vector<2x32xf32>
    %56 = arith.mulf %51, %55 : vector<2x32xf32>
    %c2 = arith.constant 2 : index
    %c0_18 = arith.constant 0 : index
    %57 = vector.load %arg8[%c2, %c0_18] : memref<16x32xf32, #tpu.memory_space<vmem>>, vector<2x32xf32>
    tpu.vector_store %arg8[%c2, %c0_18], %56 {strides = array<i32>} : memref<16x32xf32, #tpu.memory_space<vmem>>, vector<2x32xf32>,
    %58 = vector.extract_strided_slice %14 {offsets = [4, 0], sizes = [2, 128], strides = [1, 1]} : vector<16x128xf32> to vector<2x128xf32>
    %59 = arith.truncf %56 : vector<2x32xf32> to vector<2x32xbf16>
    %cst_19 = arith.constant dense<0.000000e+00> : vector<2x128xf32>
    %60 = tpu.matmul %59, %15, %cst_19 {dimension_numbers = #tpu.dot_dimension_numbers<[1], [0], [0], [1], [0, 0, 1, 1], [], []>} : vector<2x32xbf16>, vector<32x128xbf16>, vector<2x128xf32> -> vector<2x128xf32>
    %61 = arith.addf %58, %60 : vector<2x128xf32>
    %62 = arith.negf %61 : vector<2x128xf32>
    %63 = math.exp %62 : vector<2x128xf32>
    %cst_20 = arith.constant 1.000000e+00 : f32
    %64 = vector.broadcast %cst_20 : f32 to vector<2x128xf32>
    %65 = arith.addf %64, %63 : vector<2x128xf32>
    %66 = arith.divf %64, %65 : vector<2x128xf32>
    %67 = math.tanh %61 : vector<2x128xf32>
    %68 = vector.extract_strided_slice %66 {offsets = [0, 0], sizes = [2, 32], strides = [1, 1]} : vector<2x128xf32> to vector<2x32xf32>
    %69 = vector.extract_strided_slice %66 {offsets = [0, 32], sizes = [2, 32], strides = [1, 1]} : vector<2x128xf32> to vector<2x32xf32>
    %70 = vector.extract_strided_slice %67 {offsets = [0, 64], sizes = [2, 32], strides = [1, 1]} : vector<2x128xf32> to vector<2x32xf32>
    %71 = vector.extract_strided_slice %66 {offsets = [0, 96], sizes = [2, 32], strides = [1, 1]} : vector<2x128xf32> to vector<2x32xf32>
    %72 = arith.mulf %69, %54 : vector<2x32xf32>
    %73 = arith.mulf %68, %70 : vector<2x32xf32>
    %74 = arith.addf %72, %73 : vector<2x32xf32>
    %75 = math.tanh %74 : vector<2x32xf32>
    %76 = arith.mulf %71, %75 : vector<2x32xf32>
    %c4 = arith.constant 4 : index
    %c0_21 = arith.constant 0 : index
    %77 = vector.load %arg8[%c4, %c0_21] : memref<16x32xf32, #tpu.memory_space<vmem>>, vector<2x32xf32>
    tpu.vector_store %arg8[%c4, %c0_21], %76 {strides = array<i32>} : memref<16x32xf32, #tpu.memory_space<vmem>>, vector<2x32xf32>,
    %78 = vector.extract_strided_slice %14 {offsets = [6, 0], sizes = [2, 128], strides = [1, 1]} : vector<16x128xf32> to vector<2x128xf32>
    %79 = arith.truncf %76 : vector<2x32xf32> to vector<2x32xbf16>
    %cst_22 = arith.constant dense<0.000000e+00> : vector<2x128xf32>
    %80 = tpu.matmul %79, %15, %cst_22 {dimension_numbers = #tpu.dot_dimension_numbers<[1], [0], [0], [1], [0, 0, 1, 1], [], []>} : vector<2x32xbf16>, vector<32x128xbf16>, vector<2x128xf32> -> vector<2x128xf32>
    %81 = arith.addf %78, %80 : vector<2x128xf32>
    %82 = arith.negf %81 : vector<2x128xf32>
    %83 = math.exp %82 : vector<2x128xf32>
    %cst_23 = arith.constant 1.000000e+00 : f32
    %84 = vector.broadcast %cst_23 : f32 to vector<2x128xf32>
    %85 = arith.addf %84, %83 : vector<2x128xf32>
    %86 = arith.divf %84, %85 : vector<2x128xf32>
    %87 = math.tanh %81 : vector<2x128xf32>
    %88 = vector.extract_strided_slice %86 {offsets = [0, 0], sizes = [2, 32], strides = [1, 1]} : vector<2x128xf32> to vector<2x32xf32>
    %89 = vector.extract_strided_slice %86 {offsets = [0, 32], sizes = [2, 32], strides = [1, 1]} : vector<2x128xf32> to vector<2x32xf32>
    %90 = vector.extract_strided_slice %87 {offsets = [0, 64], sizes = [2, 32], strides = [1, 1]} : vector<2x128xf32> to vector<2x32xf32>
    %91 = vector.extract_strided_slice %86 {offsets = [0, 96], sizes = [2, 32], strides = [1, 1]} : vector<2x128xf32> to vector<2x32xf32>
    %92 = arith.mulf %89, %74 : vector<2x32xf32>
    %93 = arith.mulf %88, %90 : vector<2x32xf32>
    %94 = arith.addf %92, %93 : vector<2x32xf32>
    %95 = math.tanh %94 : vector<2x32xf32>
    %96 = arith.mulf %91, %95 : vector<2x32xf32>
    %c6 = arith.constant 6 : index
    %c0_24 = arith.constant 0 : index
    %97 = vector.load %arg8[%c6, %c0_24] : memref<16x32xf32, #tpu.memory_space<vmem>>, vector<2x32xf32>
    tpu.vector_store %arg8[%c6, %c0_24], %96 {strides = array<i32>} : memref<16x32xf32, #tpu.memory_space<vmem>>, vector<2x32xf32>,
    %98 = vector.extract_strided_slice %14 {offsets = [8, 0], sizes = [2, 128], strides = [1, 1]} : vector<16x128xf32> to vector<2x128xf32>
    %99 = arith.truncf %96 : vector<2x32xf32> to vector<2x32xbf16>
    %cst_25 = arith.constant dense<0.000000e+00> : vector<2x128xf32>
    %100 = tpu.matmul %99, %15, %cst_25 {dimension_numbers = #tpu.dot_dimension_numbers<[1], [0], [0], [1], [0, 0, 1, 1], [], []>} : vector<2x32xbf16>, vector<32x128xbf16>, vector<2x128xf32> -> vector<2x128xf32>
    %101 = arith.addf %98, %100 : vector<2x128xf32>
    %102 = arith.negf %101 : vector<2x128xf32>
    %103 = math.exp %102 : vector<2x128xf32>
    %cst_26 = arith.constant 1.000000e+00 : f32
    %104 = vector.broadcast %cst_26 : f32 to vector<2x128xf32>
    %105 = arith.addf %104, %103 : vector<2x128xf32>
    %106 = arith.divf %104, %105 : vector<2x128xf32>
    %107 = math.tanh %101 : vector<2x128xf32>
    %108 = vector.extract_strided_slice %106 {offsets = [0, 0], sizes = [2, 32], strides = [1, 1]} : vector<2x128xf32> to vector<2x32xf32>
    %109 = vector.extract_strided_slice %106 {offsets = [0, 32], sizes = [2, 32], strides = [1, 1]} : vector<2x128xf32> to vector<2x32xf32>
    %110 = vector.extract_strided_slice %107 {offsets = [0, 64], sizes = [2, 32], strides = [1, 1]} : vector<2x128xf32> to vector<2x32xf32>
    %111 = vector.extract_strided_slice %106 {offsets = [0, 96], sizes = [2, 32], strides = [1, 1]} : vector<2x128xf32> to vector<2x32xf32>
    %112 = arith.mulf %109, %94 : vector<2x32xf32>
    %113 = arith.mulf %108, %110 : vector<2x32xf32>
    %114 = arith.addf %112, %113 : vector<2x32xf32>
    %115 = math.tanh %114 : vector<2x32xf32>
    %116 = arith.mulf %111, %115 : vector<2x32xf32>
    %c8 = arith.constant 8 : index
    %c0_27 = arith.constant 0 : index
    %117 = vector.load %arg8[%c8, %c0_27] : memref<16x32xf32, #tpu.memory_space<vmem>>, vector<2x32xf32>
    tpu.vector_store %arg8[%c8, %c0_27], %116 {strides = array<i32>} : memref<16x32xf32, #tpu.memory_space<vmem>>, vector<2x32xf32>,
    %118 = vector.extract_strided_slice %14 {offsets = [10, 0], sizes = [2, 128], strides = [1, 1]} : vector<16x128xf32> to vector<2x128xf32>
    %119 = arith.truncf %116 : vector<2x32xf32> to vector<2x32xbf16>
    %cst_28 = arith.constant dense<0.000000e+00> : vector<2x128xf32>
    %120 = tpu.matmul %119, %15, %cst_28 {dimension_numbers = #tpu.dot_dimension_numbers<[1], [0], [0], [1], [0, 0, 1, 1], [], []>} : vector<2x32xbf16>, vector<32x128xbf16>, vector<2x128xf32> -> vector<2x128xf32>
    %121 = arith.addf %118, %120 : vector<2x128xf32>
    %122 = arith.negf %121 : vector<2x128xf32>
    %123 = math.exp %122 : vector<2x128xf32>
    %cst_29 = arith.constant 1.000000e+00 : f32
    %124 = vector.broadcast %cst_29 : f32 to vector<2x128xf32>
    %125 = arith.addf %124, %123 : vector<2x128xf32>
    %126 = arith.divf %124, %125 : vector<2x128xf32>
    %127 = math.tanh %121 : vector<2x128xf32>
    %128 = vector.extract_strided_slice %126 {offsets = [0, 0], sizes = [2, 32], strides = [1, 1]} : vector<2x128xf32> to vector<2x32xf32>
    %129 = vector.extract_strided_slice %126 {offsets = [0, 32], sizes = [2, 32], strides = [1, 1]} : vector<2x128xf32> to vector<2x32xf32>
    %130 = vector.extract_strided_slice %127 {offsets = [0, 64], sizes = [2, 32], strides = [1, 1]} : vector<2x128xf32> to vector<2x32xf32>
    %131 = vector.extract_strided_slice %126 {offsets = [0, 96], sizes = [2, 32], strides = [1, 1]} : vector<2x128xf32> to vector<2x32xf32>
    %132 = arith.mulf %129, %114 : vector<2x32xf32>
    %133 = arith.mulf %128, %130 : vector<2x32xf32>
    %134 = arith.addf %132, %133 : vector<2x32xf32>
    %135 = math.tanh %134 : vector<2x32xf32>
    %136 = arith.mulf %131, %135 : vector<2x32xf32>
    %c10 = arith.constant 10 : index
    %c0_30 = arith.constant 0 : index
    %137 = vector.load %arg8[%c10, %c0_30] : memref<16x32xf32, #tpu.memory_space<vmem>>, vector<2x32xf32>
    tpu.vector_store %arg8[%c10, %c0_30], %136 {strides = array<i32>} : memref<16x32xf32, #tpu.memory_space<vmem>>, vector<2x32xf32>,
    %138 = vector.extract_strided_slice %14 {offsets = [12, 0], sizes = [2, 128], strides = [1, 1]} : vector<16x128xf32> to vector<2x128xf32>
    %139 = arith.truncf %136 : vector<2x32xf32> to vector<2x32xbf16>
    %cst_31 = arith.constant dense<0.000000e+00> : vector<2x128xf32>
    %140 = tpu.matmul %139, %15, %cst_31 {dimension_numbers = #tpu.dot_dimension_numbers<[1], [0], [0], [1], [0, 0, 1, 1], [], []>} : vector<2x32xbf16>, vector<32x128xbf16>, vector<2x128xf32> -> vector<2x128xf32>
    %141 = arith.addf %138, %140 : vector<2x128xf32>
    %142 = arith.negf %141 : vector<2x128xf32>
    %143 = math.exp %142 : vector<2x128xf32>
    %cst_32 = arith.constant 1.000000e+00 : f32
    %144 = vector.broadcast %cst_32 : f32 to vector<2x128xf32>
    %145 = arith.addf %144, %143 : vector<2x128xf32>
    %146 = arith.divf %144, %145 : vector<2x128xf32>
    %147 = math.tanh %141 : vector<2x128xf32>
    %148 = vector.extract_strided_slice %146 {offsets = [0, 0], sizes = [2, 32], strides = [1, 1]} : vector<2x128xf32> to vector<2x32xf32>
    %149 = vector.extract_strided_slice %146 {offsets = [0, 32], sizes = [2, 32], strides = [1, 1]} : vector<2x128xf32> to vector<2x32xf32>
    %150 = vector.extract_strided_slice %147 {offsets = [0, 64], sizes = [2, 32], strides = [1, 1]} : vector<2x128xf32> to vector<2x32xf32>
    %151 = vector.extract_strided_slice %146 {offsets = [0, 96], sizes = [2, 32], strides = [1, 1]} : vector<2x128xf32> to vector<2x32xf32>
    %152 = arith.mulf %149, %134 : vector<2x32xf32>
    %153 = arith.mulf %148, %150 : vector<2x32xf32>
    %154 = arith.addf %152, %153 : vector<2x32xf32>
    %155 = math.tanh %154 : vector<2x32xf32>
    %156 = arith.mulf %151, %155 : vector<2x32xf32>
    %c12 = arith.constant 12 : index
    %c0_33 = arith.constant 0 : index
    %157 = vector.load %arg8[%c12, %c0_33] : memref<16x32xf32, #tpu.memory_space<vmem>>, vector<2x32xf32>
    tpu.vector_store %arg8[%c12, %c0_33], %156 {strides = array<i32>} : memref<16x32xf32, #tpu.memory_space<vmem>>, vector<2x32xf32>,
    %158 = vector.extract_strided_slice %14 {offsets = [14, 0], sizes = [2, 128], strides = [1, 1]} : vector<16x128xf32> to vector<2x128xf32>
    %159 = arith.truncf %156 : vector<2x32xf32> to vector<2x32xbf16>
    %cst_34 = arith.constant dense<0.000000e+00> : vector<2x128xf32>
    %160 = tpu.matmul %159, %15, %cst_34 {dimension_numbers = #tpu.dot_dimension_numbers<[1], [0], [0], [1], [0, 0, 1, 1], [], []>} : vector<2x32xbf16>, vector<32x128xbf16>, vector<2x128xf32> -> vector<2x128xf32>
    %161 = arith.addf %158, %160 : vector<2x128xf32>
    %162 = arith.negf %161 : vector<2x128xf32>
    %163 = math.exp %162 : vector<2x128xf32>
    %cst_35 = arith.constant 1.000000e+00 : f32
    %164 = vector.broadcast %cst_35 : f32 to vector<2x128xf32>
    %165 = arith.addf %164, %163 : vector<2x128xf32>
    %166 = arith.divf %164, %165 : vector<2x128xf32>
    %167 = math.tanh %161 : vector<2x128xf32>
    %168 = vector.extract_strided_slice %166 {offsets = [0, 0], sizes = [2, 32], strides = [1, 1]} : vector<2x128xf32> to vector<2x32xf32>
    %169 = vector.extract_strided_slice %166 {offsets = [0, 32], sizes = [2, 32], strides = [1, 1]} : vector<2x128xf32> to vector<2x32xf32>
    %170 = vector.extract_strided_slice %167 {offsets = [0, 64], sizes = [2, 32], strides = [1, 1]} : vector<2x128xf32> to vector<2x32xf32>
    %171 = vector.extract_strided_slice %166 {offsets = [0, 96], sizes = [2, 32], strides = [1, 1]} : vector<2x128xf32> to vector<2x32xf32>
    %172 = arith.mulf %169, %154 : vector<2x32xf32>
    %173 = arith.mulf %168, %170 : vector<2x32xf32>
    %174 = arith.addf %172, %173 : vector<2x32xf32>
    %175 = math.tanh %174 : vector<2x32xf32>
    %176 = arith.mulf %171, %175 : vector<2x32xf32>
    %c14 = arith.constant 14 : index
    %c0_36 = arith.constant 0 : index
    %177 = vector.load %arg8[%c14, %c0_36] : memref<16x32xf32, #tpu.memory_space<vmem>>, vector<2x32xf32>
    tpu.vector_store %arg8[%c14, %c0_36], %176 {strides = array<i32>} : memref<16x32xf32, #tpu.memory_space<vmem>>, vector<2x32xf32>,
    %c0_37 = arith.constant 0 : index
    %c0_38 = arith.constant 0 : index
    %178 = vector.load %arg8[%c0_37, %c0_38] : memref<16x32xf32, #tpu.memory_space<vmem>>, vector<16x32xf32>
    %179 = arith.truncf %178 : vector<16x32xf32> to vector<16x32xbf16>
    %c0_39 = arith.constant 0 : index
    %c0_40 = arith.constant 0 : index
    %180 = vector.load %arg5[%c0_39, %c0_40] : memref<32x16xbf16, #tpu.memory_space<vmem>>, vector<32x16xbf16>
    %cst_41 = arith.constant dense<0.000000e+00> : vector<16x16xf32>
    %181 = tpu.matmul %179, %180, %cst_41 {dimension_numbers = #tpu.dot_dimension_numbers<[1], [0], [0], [1], [0, 0, 1, 1], [], []>} : vector<16x32xbf16>, vector<32x16xbf16>, vector<16x16xf32> -> vector<16x16xf32>
    %c0_42 = arith.constant 0 : index
    %c0_43 = arith.constant 0 : index
    %182 = vector.load %arg6[%c0_42, %c0_43] : memref<1x16xf32, #tpu.memory_space<vmem>>, vector<1x16xf32>
    %183 = vector.broadcast %182 : vector<1x16xf32> to vector<16x16xf32>
    %184 = arith.addf %181, %183 : vector<16x16xf32>
    %c0_44 = arith.constant 0 : index
    %c0_45 = arith.constant 0 : index
    %185 = vector.load %arg7[%c0_44, %c0_45] : memref<16x16xf32, #tpu.memory_space<vmem>>, vector<16x16xf32>
    tpu.vector_store %arg7[%c0_44, %c0_45], %184 {strides = array<i32>} : memref<16x16xf32, #tpu.memory_space<vmem>>, vector<16x16xf32>,
    return
  }
}

</mosaic_0001>

<bundles_post_ra>
// kernel: simple_lstm_forward.1
= control target key start
LH: loop header
LB: loop body
LE: loop exit
PB: predicated region body
PF: predicated region fallthrough
CT: control target
= control target key end

     0   :  { %v1182_v0 = vmov 0   ;;  %v1183_v2 = vmov 0.0   ;;  %vm1184_vm0 = vmmov 0   ;;  %v29_v9 = vlaneseq  ;;  %s1185_s19 = smov 64   ;;  %s1433_s0 = inlined_call_operand.vmem [shape: s32[16,1], index: 0, kind: input, shape index: {}]   ;;  %s1434_s1 = inlined_call_operand.vmem [shape: bf16[64,32], index: 1, kind: input, shape index: {}]   ;;  %s1435_s2 = inlined_call_operand.vmem [shape: bf16[32,128], index: 2, kind: input, shape index: {}]   ;;  %s1436_s3 = inlined_call_operand.vmem [shape: bf16[32,128], index: 3, kind: input, shape index: {}]   ;;  %s1437_s4 = inlined_call_operand.vmem [shape: f32[1,128], index: 4, kind: input, shape index: {}]   ;;  %s1438_s5 = inlined_call_operand.vmem [shape: bf16[32,16], index: 5, kind: input, shape index: {}]   ;;  %s1439_s6 = inlined_call_operand.vmem [shape: f32[1,16], index: 6, kind: input, shape index: {}]   ;;  %s1440_s7 = inlined_call_operand.vmem [shape: f32[16,16], index: 7, kind: output, shape index: {}]  }
   0x1   :  { %1107 = vset.pattern.permute.xlu0 %v1182_v0  ;;  %v27_v1 = vld [vmem:[%s1433_s0] sm:$0xff]  ;;  %1010 = vmatprep.subr.bf16.mxu0 %v1183_v2  ;;  %v28_v4 = vld [vmem:[%s1433_s0 + $0x8] sm:$0xff]  ;;  %v1110_v6 = vld [vmem:[%s1434_s1 + $0x10] sm:$0xff]   ;;  %vm76_vm3 = vcmask 523264   ;;  %vm145_vm4 = vcmask 261120   ;;  %vm278_vm5 = vcmask 254976  }
   0x2   :  { %32 = vperm.xlu0 %1107, %v27_v1   ;;  %v1108_v3 = vld [vmem:[%s1434_s1] sm:$0xff]   ;;  %1022 = vmatprep.subr.bf16.mxu1 %v1183_v2  ;;  %v1109_v5 = vld [vmem:[%s1434_s1 + $0x8] sm:$0xff]   ;;  %v1111_v8 = vld [vmem:[%s1434_s1 + $0x18] sm:$0xff]   ;;  %v30_v10 = vand.u32 127, %v29_v9  ;;  %vm447_vm6 = vcmask 259076   ;;  %vm362_vm7 = vcmask 257026  }
   0x3   :  { %1011 = vmatpush3.bf16.msra.mxu0 %v1108_v3  ;;  %1018 = vmatprep.mubr.msk.bf16.mxu0 %vm1184_vm0, %v1183_v2  ;;  %v1112_v7 = vld [vmem:[%s1435_s2] sm:$0xff]   ;;  %v1113_v16 = vld [vmem:[%s1435_s2 + $0x8] sm:$0xff]   ;;  %vm532_vm8 = vcmask 261126   ;;  %vm936_vm9 = vcmask 130048  }
   0x4   :  { %1012 = vmatprep.subr.bf16.mxu0 %v1183_v2  ;;  %1026 = vmatprep.mubr.msk.bf16.mxu1 %vm1184_vm0, %v1183_v2  ;;  %v1270_v17 = vld [vmem:[%s1436_s3] sm:$0xff]   ;;  %v1277_v18 = vld [vmem:[%s1436_s3 + $0x8] sm:$0xff]  }
   0x5   :  { %1023 = vmatpush3.bf16.msra.mxu1 %v1112_v7  ;;  %v950_v26 = vld [vmem:[%s1437_s4] ss:$0 sm:$0xff]  ;;  %s1186_s4 = smov 32  }
   0x6   :  { %35 = vperm.xlu0 %1107, %v28_v4   ;;  %1024 = vmatprep.subr.bf16.mxu1 %v1183_v2 }
   0x7   :  { %1013 = vmatpush3.bf16.msra.mxu0 %v1109_v5 }
   0x8   :  { %1014 = vmatprep.subr.bf16.mxu0 %v1183_v2 }
   0x9   :  { %1025 = vmatpush3.bf16.msra.mxu1 %v1113_v16 }
   0xa   :  { %1030 = vmatprep.subr.bf16.mxu1 %v1183_v2 }
   0xb   :  { %1015 = vmatpush3.bf16.msra.mxu0 %v1110_v6 }
   0xc   :  { %1016 = vmatprep.subr.bf16.mxu0 %v1183_v2 }
   0xf   :  { %1017 = vmatpush3.bf16.msra.mxu0 %v1111_v8 }
  0x10   :  { %1038 = vmatprep.subr.bf16.mxu0 %v1183_v2 }
  0x81   :  { %v33_v11 = vpop.permute.xlu0 %32 }
  0x82   :  { %vm37_vm1 = vcmp.eq.s32.totalorder %v33_v11, %v30_v10 }
  0x83   :  { %v943_v13 = vsel %vm37_vm1, 1.0, %v1183_v2 }
  0x85   :  { %v36_v12 = vpop.permute.xlu0 %35 }
  0x86   :  { %vm38_vm2 = vcmp.eq.s32.totalorder %v36_v12, %v30_v10 }
  0x87   :  { %v944_v14 = vsel %vm38_vm2, 1.0, %v1183_v2 }
  0x88   :  { %v43_v15 = vpack.c.bf16 %v944_v14, %v943_v13 }
  0x8a   :  { %1019 = vmatmul.mubr.msk.bf16.vlgmr.msra.gmra.mrb[0].mxu0 %vm76_vm3, %v43_v15 }
  0x8b   :  { %1042 = vmatprep.mubr.msk.bf16.mxu0 %vm1184_vm0, %v1183_v2  ;;  %1039 = vmatpush3.bf16.msra.mxu0 %v1270_v17 }
  0x8c   :  { %1040 = vmatprep.subr.bf16.mxu0 %v1183_v2 }
  0x8f   :  { %1041 = vmatpush3.bf16.msra.mxu0 %v1277_v18 }
  0x90   :  { %1054 = vmatprep.subr.bf16.mxu0 %v1183_v2 }
 0x15d   :  { %v114_v19 = vpop.f32.mrb[0].mxu0 }
 0x15e   :  { %v1020_v20 = vpop.f32.mrb[1].mxu0 }
 0x15f   :  { %v117_v21 = vpop.f32.mrb[2].mxu0 }
 0x160   :  { %v121_v22 = vpack.c.bf16 %v117_v21, %v114_v19  ;;  %v1021_v23 = vpop.f32.mrb[3].mxu0 }
 0x162   :  { %1027 = vmatmul.mubr.msk.bf16.vlgmr.msra.gmra.mrb[0].mxu1 %vm145_vm4, %v121_v22 }
 0x163   :  { %1031 = vmatpush3.bf16.msra.mxu1 %v1270_v17  ;;  %1034 = vmatprep.mubr.msk.bf16.mxu1 %vm1184_vm0, %v1183_v2 }
 0x164   :  { %1032 = vmatprep.subr.bf16.mxu1 %v1183_v2 }
 0x167   :  { %1033 = vmatpush3.bf16.msra.mxu1 %v1277_v18 }
 0x168   :  { %1046 = vmatprep.subr.bf16.mxu1 %v1183_v2 }
 0x16a   :  { %1035 = vmatmul.mubr.bf16.vlgmr.msra.gmra.mrb[4].mxu1 %v1182_v0 }
 0x16b   :  { %1047 = vmatpush3.bf16.msra.mxu1 %v1270_v17  ;;  %1050 = vmatprep.mubr.msk.bf16.mxu1 %vm1184_vm0, %v1183_v2 }
 0x16c   :  { %1048 = vmatprep.subr.bf16.mxu1 %v1183_v2 }
 0x16f   :  { %1049 = vmatpush3.bf16.msra.mxu1 %v1277_v18 }
 0x170   :  { %1062 = vmatprep.subr.bf16.mxu1 %v1183_v2 }
 0x235   :  { %v183_v24 = vpop.f32.mrb[0].mxu1 }
 0x236   :  { %v1028_v25 = vpop.f32.mrb[1].mxu1  ;;  %v1299_v30 = vadd.f32 %v950_v26, %v183_v24 }
 0x237   :  { %v186_v27 = vpop.f32.mrb[2].mxu1 }
 0x238   :  { %v1297_v28 = vadd.f32 %v950_v26, %v186_v27  ;;  %v1029_v29 = vpop.f32.mrb[3].mxu1 }
 0x23d   :  { %v243_v31 = vpop.f32.mrb[4].mxu1 }
 0x23e   :  { %v249_v32 = vadd.f32 %v243_v31, %v1299_v30  ;;  %v1036_v33 = vpop.f32.mrb[5].mxu1 }
 0x23f   :  { %v246_v34 = vpop.f32.mrb[6].mxu1 }
 0x240   :  { %1118 = vtanh.f32 %v249_v32  ;;  %v1037_v35 = vpop.f32.mrb[7].mxu1  ;;  %v956_v37 = vmul.f32 -1.442695, %v249_v32 }
 0x242   :  { %1120 = vpow2.f32 %v956_v37 }
 0x24a   :  { %v1119_v36 = vpop.eup %1118 }
 0x24b   :  { %259 = vrot.lane.b32.xlu1 %v1119_v36, %s1185_s19 }
 0x24c   :  { %v1121_v38 = vpop.eup %1120 }
 0x24d   :  { %v253_v39 = vadd.f32 1.0, %v1121_v38 }
 0x24f   :  { %1122 = vrcp.f32 %v253_v39 }
 0x259   :  { %v1123_v40 = vpop.eup %1122 }
 0x25a   :  { %v257_v43 = vmul.f32 0.0, %v1123_v40 }
 0x2bd   :  { %v260_v41 = vpop.permute.xlu1 %259 }
 0x2be   :  { %v262_v42 = vmul.f32 %v1123_v40, %v260_v41 }
 0x2c0   :  { %264 = vrot.lane.b32.xlu1 %v262_v42, %s1186_s4 }
 0x332   :  { %v265_v44 = vpop.permute.xlu1 %264 }
 0x333   :  { %v267_v45 = vadd.f32 %v265_v44, %v257_v43 }
 0x335   :  { %1124 = vtanh.f32 %v267_v45  ;;  %v339_v0 = vrot.slane %v267_v45, 6 }
 0x33f   :  { %v1125_v46 = vpop.eup %1124 }
 0x340   :  { %270 = vrot.lane.b32.xlu0 %v1125_v46, %s1185_s19 }
 0x3b2   :  { %v271_v47 = vpop.permute.xlu0 %270 }
 0x3b3   :  { %v1305_v48 = vmul.f32 %v1123_v40, %v271_v47 }
 0x3b5   :  { %v280_v49 = vpack.c.bf16 %v1305_v48, %v1305_v48 }
 0x3b7   :  { %282 = vrot.lane.b32.xlu1 %v280_v49, %s1186_s4 }
 0x429   :  { %v283_v50 = vpop.permute.xlu1 %282 }
 0x42a   :  { %1043 = vmatmul.mubr.msk.bf16.vlgmr.msra.gmra.mrb[4].mxu0 %vm145_vm4, %v283_v50 }
 0x42b   :  { %1055 = vmatpush3.bf16.msra.mxu0 %v1270_v17  ;;  %1058 = vmatprep.mubr.msk.bf16.mxu0 %vm1184_vm0, %v1183_v2 }
 0x42c   :  { %1056 = vmatprep.subr.bf16.mxu0 %v1183_v2 }
 0x42f   :  { %1057 = vmatpush3.bf16.msra.mxu0 %v1277_v18 }
 0x430   :  { %1070 = vmatprep.subr.bf16.mxu0 %v1183_v2 }
 0x4fd   :  { %v321_v51 = vpop.f32.mrb[4].mxu0 }
 0x4fe   :  { %v328_v52 = vrot.slane %v321_v51, 6  ;;  %v1044_v53 = vpop.f32.mrb[5].mxu0 }
 0x4ff   :  { %v324_v54 = vpop.f32.mrb[6].mxu0 }
 0x500   :  { %v330_v55 = vadd.f32 %v328_v52, %v1299_v30  ;;  %v1045_v56 = vpop.f32.mrb[7].mxu0 }
 0x502   :  { %1126 = vtanh.f32 %v330_v55  ;;  %v958_v58 = vmul.f32 -1.442695, %v330_v55 }
 0x504   :  { %1128 = vpow2.f32 %v958_v58 }
 0x50c   :  { %v1127_v57 = vpop.eup %1126 }
 0x50d   :  { %343 = vrot.lane.b32.xlu0 %v1127_v57, %s1185_s19 }
 0x50e   :  { %v1129_v59 = vpop.eup %1128 }
 0x50f   :  { %v334_v60 = vadd.f32 1.0, %v1129_v59 }
 0x511   :  { %1130 = vrcp.f32 %v334_v60 }
 0x51b   :  { %v1131_v61 = vpop.eup %1130 }
 0x51c   :  { %v341_v1 = vmul.f32 %v1131_v61, %v339_v0 }
 0x57f   :  { %v344_v62 = vpop.permute.xlu0 %343 }
 0x580   :  { %v346_v63 = vmul.f32 %v1131_v61, %v344_v62 }
 0x582   :  { %348 = vrot.lane.b32.xlu1 %v346_v63, %s1186_s4 }
 0x5f4   :  { %v349_v3 = vpop.permute.xlu1 %348 }
 0x5f5   :  { %v351_v4 = vadd.f32 %v349_v3, %v341_v1 }
 0x5f7   :  { %1132 = vtanh.f32 %v351_v4  ;;  %v424_v26 = vrot.slane %v351_v4, 6 }
 0x601   :  { %v1133_v5 = vpop.eup %1132 }
 0x602   :  { %354 = vrot.lane.b32.xlu0 %v1133_v5, %s1185_s19 }
 0x674   :  { %v355_v6 = vpop.permute.xlu0 %354 }
 0x675   :  { %v1321_v7 = vmul.f32 %v1131_v61, %v355_v6 }
 0x677   :  { %v364_v8 = vpack.c.bf16 %v1321_v7, %v1321_v7 }
 0x679   :  { %v366_v9 = vrot.slane %v364_v8, 1 }
 0x67b   :  { %367 = vrot.lane.b32.xlu1 %v366_v9, %s1186_s4 }
 0x6ed   :  { %v368_v10 = vpop.permute.xlu1 %367 }
 0x6ee   :  { %1051 = vmatmul.mubr.msk.bf16.vlgmr.msra.gmra.mrb[8].mxu1 %vm145_vm4, %v368_v10 }
 0x6ef   :  { %1063 = vmatpush3.bf16.msra.mxu1 %v1270_v17  ;;  %1066 = vmatprep.mubr.msk.bf16.mxu1 %vm1184_vm0, %v1183_v2 }
 0x6f0   :  { %1064 = vmatprep.subr.bf16.mxu1 %v1183_v2 }
 0x6f3   :  { %1065 = vmatpush3.bf16.msra.mxu1 %v1277_v18 }
 0x6f4   :  { %1078 = vmatprep.subr.bf16.mxu1 %v1183_v2 }
 0x7c1   :  { %v406_v11 = vpop.f32.mrb[8].mxu1 }
 0x7c2   :  { %v413_v12 = vrot.slane %v406_v11, 4  ;;  %v1052_v13 = vpop.f32.mrb[9].mxu1 }
 0x7c3   :  { %v409_v14 = vpop.f32.mrb[10].mxu1 }
 0x7c4   :  { %v415_v15 = vadd.f32 %v413_v12, %v1299_v30  ;;  %v1053_v16 = vpop.f32.mrb[11].mxu1 }
 0x7c6   :  { %1134 = vtanh.f32 %v415_v15  ;;  %v960_v20 = vmul.f32 -1.442695, %v415_v15 }
 0x7c8   :  { %1136 = vpow2.f32 %v960_v20 }
 0x7d0   :  { %v1135_v19 = vpop.eup %1134 }
 0x7d1   :  { %428 = vrot.lane.b32.xlu0 %v1135_v19, %s1185_s19 }
 0x7d2   :  { %v1137_v21 = vpop.eup %1136 }
 0x7d3   :  { %v419_v22 = vadd.f32 1.0, %v1137_v21 }
 0x7d5   :  { %1138 = vrcp.f32 %v419_v22 }
 0x7df   :  { %v1139_v23 = vpop.eup %1138 }
 0x7e0   :  { %v426_v27 = vmul.f32 %v1139_v23, %v424_v26 }
 0x843   :  { %v429_v24 = vpop.permute.xlu0 %428 }
 0x844   :  { %v431_v25 = vmul.f32 %v1139_v23, %v429_v24 }
 0x846   :  { %433 = vrot.lane.b32.xlu1 %v431_v25, %s1186_s4 }
 0x8b8   :  { %v434_v29 = vpop.permute.xlu1 %433 }
 0x8b9   :  { %v436_v31 = vadd.f32 %v434_v29, %v426_v27 }
 0x8bb   :  { %1140 = vtanh.f32 %v436_v31  ;;  %v509_v52 = vrot.slane %v436_v31, 6 }
 0x8c5   :  { %v1141_v32 = vpop.eup %1140 }
 0x8c6   :  { %439 = vrot.lane.b32.xlu0 %v1141_v32, %s1185_s19 }
 0x938   :  { %v440_v33 = vpop.permute.xlu0 %439 }
 0x939   :  { %v1337_v34 = vmul.f32 %v1139_v23, %v440_v33 }
 0x93b   :  { %v449_v35 = vpack.c.bf16 %v1337_v34, %v1337_v34 }
 0x93d   :  { %v451_v36 = vrot.slane %v449_v35, 2 }
 0x93f   :  { %452 = vrot.lane.b32.xlu1 %v451_v36, %s1186_s4 }
 0x9b1   :  { %v453_v37 = vpop.permute.xlu1 %452 }
 0x9b2   :  { %1059 = vmatmul.mubr.msk.bf16.vlgmr.msra.gmra.mrb[8].mxu0 %vm145_vm4, %v453_v37 }
 0x9b3   :  { %1071 = vmatpush3.bf16.msra.mxu0 %v1270_v17  ;;  %1074 = vmatprep.mubr.msk.bf16.mxu0 %vm1184_vm0, %v1183_v2 }
 0x9b4   :  { %1072 = vmatprep.subr.bf16.mxu0 %v1183_v2 }
 0x9b7   :  { %1073 = vmatpush3.bf16.msra.mxu0 %v1277_v18 }
 0x9b8   :  { %1086 = vmatprep.subr.bf16.mxu0 %v1183_v2 }
 0xa85   :  { %v491_v38 = vpop.f32.mrb[8].mxu0 }
 0xa86   :  { %v498_v39 = vrot.slane %v491_v38, 2  ;;  %v1060_v40 = vpop.f32.mrb[9].mxu0 }
 0xa87   :  { %v494_v41 = vpop.f32.mrb[10].mxu0 }
 0xa88   :  { %v500_v42 = vadd.f32 %v498_v39, %v1299_v30  ;;  %v1061_v43 = vpop.f32.mrb[11].mxu0 }
 0xa8a   :  { %1142 = vtanh.f32 %v500_v42  ;;  %v962_v45 = vmul.f32 -1.442695, %v500_v42 }
 0xa8c   :  { %1144 = vpow2.f32 %v962_v45 }
 0xa94   :  { %v1143_v44 = vpop.eup %1142 }
 0xa95   :  { %513 = vrot.lane.b32.xlu0 %v1143_v44, %s1185_s19 }
 0xa96   :  { %v1145_v46 = vpop.eup %1144 }
 0xa97   :  { %v504_v47 = vadd.f32 1.0, %v1145_v46 }
 0xa99   :  { %1146 = vrcp.f32 %v504_v47 }
 0xaa3   :  { %v1147_v49 = vpop.eup %1146 }
 0xaa4   :  { %v511_v53 = vmul.f32 %v1147_v49, %v509_v52 }
 0xb07   :  { %v514_v50 = vpop.permute.xlu0 %513 }
 0xb08   :  { %v516_v51 = vmul.f32 %v1147_v49, %v514_v50 }
 0xb0a   :  { %518 = vrot.lane.b32.xlu1 %v516_v51, %s1186_s4 }
 0xb7c   :  { %v519_v54 = vpop.permute.xlu1 %518 }
 0xb7d   :  { %v521_v55 = vadd.f32 %v519_v54, %v511_v53 }
 0xb7f   :  { %1148 = vtanh.f32 %v521_v55  ;;  %v591_v11 = vrot.slane %v521_v55, 6 }
 0xb89   :  { %v1149_v30 = vpop.eup %1148 }
 0xb8a   :  { %524 = vrot.lane.b32.xlu0 %v1149_v30, %s1185_s19 }
 0xbfc   :  { %v525_v56 = vpop.permute.xlu0 %524 }
 0xbfd   :  { %v1353_v57 = vmul.f32 %v1147_v49, %v525_v56 }
 0xbff   :  { %v534_v58 = vpack.c.bf16 %v1353_v57, %v1353_v57 }
 0xc01   :  { %v536_v59 = vrot.slane %v534_v58, 3 }
 0xc03   :  { %537 = vrot.lane.b32.xlu1 %v536_v59, %s1186_s4 }
 0xc75   :  { %v538_v60 = vpop.permute.xlu1 %537 }
 0xc76   :  { %1067 = vmatmul.mubr.msk.bf16.vlgmr.msra.gmra.mrb[12].mxu1 %vm145_vm4, %v538_v60 }
 0xc77   :  { %1079 = vmatpush3.bf16.msra.mxu1 %v1270_v17  ;;  %1082 = vmatprep.mubr.msk.bf16.mxu1 %vm1184_vm0, %v1183_v2 }
 0xc78   :  { %1080 = vmatprep.subr.bf16.mxu1 %v1183_v2 }
 0xc7b   :  { %1081 = vmatpush3.bf16.msra.mxu1 %v1277_v18 }
 0xc7c   :  { %1094 = vmatprep.subr.bf16.mxu1 %v1183_v2 }
 0xd49   :  { %v576_v61 = vpop.f32.mrb[12].mxu1 }
 0xd4a   :  { %v582_v62 = vadd.f32 %v576_v61, %v1297_v28  ;;  %v1068_v63 = vpop.f32.mrb[13].mxu1 }
 0xd4b   :  { %v579_v0 = vpop.f32.mrb[14].mxu1 }
 0xd4c   :  { %1150 = vtanh.f32 %v582_v62  ;;  %v1069_v1 = vpop.f32.mrb[15].mxu1  ;;  %v964_v4 = vmul.f32 -1.442695, %v582_v62 }
 0xd4e   :  { %1152 = vpow2.f32 %v964_v4 }
 0xd56   :  { %v1151_v3 = vpop.eup %1150 }
 0xd57   :  { %595 = vrot.lane.b32.xlu0 %v1151_v3, %s1185_s19 }
 0xd58   :  { %v1153_v5 = vpop.eup %1152 }
 0xd59   :  { %v586_v6 = vadd.f32 1.0, %v1153_v5 }
 0xd5b   :  { %1154 = vrcp.f32 %v586_v6 }
 0xd65   :  { %v1155_v8 = vpop.eup %1154 }
 0xd66   :  { %v593_v12 = vmul.f32 %v1155_v8, %v591_v11 }
 0xdc9   :  { %v596_v9 = vpop.permute.xlu0 %595 }
 0xdca   :  { %v598_v10 = vmul.f32 %v1155_v8, %v596_v9 }
 0xdcc   :  { %600 = vrot.lane.b32.xlu1 %v598_v10, %s1186_s4 }
 0xe3e   :  { %v601_v13 = vpop.permute.xlu1 %600 }
 0xe3f   :  { %v603_v14 = vadd.f32 %v601_v13, %v593_v12 }
 0xe41   :  { %1156 = vtanh.f32 %v603_v14 }
 0xe4b   :  { %v1157_v15 = vpop.eup %1156 }
 0xe4c   :  { %606 = vrot.lane.b32.xlu0 %v1157_v15, %s1185_s19 }
 0xebe   :  { %v607_v16 = vpop.permute.xlu0 %606 }
 0xebf   :  { %v1369_v19 = vmul.f32 %v1155_v8, %v607_v16 }
 0xec1   :  { %v615_v20 = vpack.c.bf16 %v1369_v19, %v1369_v19 }
 0xec3   :  { %617 = vrot.lane.b32.xlu1 %v615_v20, %s1186_s4 }
 0xf35   :  { %v618_v21 = vpop.permute.xlu1 %617 }
 0xf36   :  { %1075 = vmatmul.mubr.msk.bf16.vlgmr.msra.gmra.mrb[12].mxu0 %vm145_vm4, %v618_v21 }
 0xf37   :  { %1087 = vmatpush3.bf16.msra.mxu0 %v1270_v17  ;;  %1090 = vmatprep.mubr.msk.bf16.mxu0 %vm1184_vm0, %v1183_v2 }
 0xf38   :  { %1088 = vmatprep.subr.bf16.mxu0 %v1183_v2 }
 0xf3b   :  { %1089 = vmatpush3.bf16.msra.mxu0 %v1277_v18  ;;  %v674_v18 = vrot.slane %v603_v14, 6 }
0x1009   :  { %v656_v22 = vpop.f32.mrb[12].mxu0 }
0x100a   :  { %v663_v23 = vrot.slane %v656_v22, 6  ;;  %v1076_v24 = vpop.f32.mrb[13].mxu0 }
0x100b   :  { %v659_v25 = vpop.f32.mrb[14].mxu0 }
0x100c   :  { %v665_v26 = vadd.f32 %v663_v23, %v1297_v28  ;;  %v1077_v27 = vpop.f32.mrb[15].mxu0 }
0x100e   :  { %1158 = vtanh.f32 %v665_v26  ;;  %v966_v31 = vmul.f32 -1.442695, %v665_v26 }
0x1010   :  { %1160 = vpow2.f32 %v966_v31 }
0x1018   :  { %v1159_v29 = vpop.eup %1158 }
0x1019   :  { %678 = vrot.lane.b32.xlu0 %v1159_v29, %s1185_s19 }
0x101a   :  { %v1161_v17 = vpop.eup %1160 }
0x101b   :  { %v669_v32 = vadd.f32 1.0, %v1161_v17  ;;  %v1117_v17 = vld [vmem:[%s1438_s5 + $0x8] sm:$0xff]  }
0x101d   :  { %1162 = vrcp.f32 %v669_v32 }
0x1027   :  { %v1163_v33 = vpop.eup %1162 }
0x1028   :  { %v676_v37 = vmul.f32 %v1163_v33, %v674_v18 }
0x108b   :  { %v679_v35 = vpop.permute.xlu0 %678 }
0x108c   :  { %v681_v36 = vmul.f32 %v1163_v33, %v679_v35 }
0x108e   :  { %683 = vrot.lane.b32.xlu1 %v681_v36, %s1186_s4 }
0x1100   :  { %v684_v38 = vpop.permute.xlu1 %683 }
0x1101   :  { %v686_v39 = vadd.f32 %v684_v38, %v676_v37 }
0x1103   :  { %1164 = vtanh.f32 %v686_v39  ;;  %v758_v60 = vrot.slane %v686_v39, 6 }
0x110d   :  { %v1165_v40 = vpop.eup %1164 }
0x110e   :  { %689 = vrot.lane.b32.xlu0 %v1165_v40, %s1185_s19 }
0x1180   :  { %v690_v41 = vpop.permute.xlu0 %689 }
0x1181   :  { %v1384_v42 = vmul.f32 %v1163_v33, %v690_v41 }
0x1183   :  { %v698_v43 = vpack.c.bf16 %v1384_v42, %v1384_v42 }
0x1185   :  { %v700_v44 = vrot.slane %v698_v43, 1 }
0x1187   :  { %701 = vrot.lane.b32.xlu1 %v700_v44, %s1186_s4 }
0x11f9   :  { %v702_v45 = vpop.permute.xlu1 %701 }
0x11fa   :  { %1083 = vmatmul.mubr.msk.bf16.vlgmr.msra.gmra.mrb[16].mxu1 %vm145_vm4, %v702_v45 }
0x11fb   :  { %1098 = vmatprep.mubr.msk.bf16.mxu1 %vm1184_vm0, %v1183_v2 }
0x12cd   :  { %v740_v46 = vpop.f32.mrb[16].mxu1 }
0x12ce   :  { %v747_v47 = vrot.slane %v740_v46, 4  ;;  %v1084_v49 = vpop.f32.mrb[17].mxu1 }
0x12cf   :  { %v743_v50 = vpop.f32.mrb[18].mxu1 }
0x12d0   :  { %v749_v51 = vadd.f32 %v747_v47, %v1297_v28  ;;  %v1085_v52 = vpop.f32.mrb[19].mxu1 }
0x12d2   :  { %1166 = vtanh.f32 %v749_v51  ;;  %v968_v54 = vmul.f32 -1.442695, %v749_v51 }
0x12d4   :  { %1168 = vpow2.f32 %v968_v54 }
0x12dc   :  { %v1167_v53 = vpop.eup %1166 }
0x12dd   :  { %762 = vrot.lane.b32.xlu0 %v1167_v53, %s1185_s19 }
0x12de   :  { %v1169_v55 = vpop.eup %1168 }
0x12df   :  { %v753_v30 = vadd.f32 1.0, %v1169_v55 }
0x12e1   :  { %1170 = vrcp.f32 %v753_v30 }
0x12eb   :  { %v1171_v56 = vpop.eup %1170 }
0x12ec   :  { %v760_v61 = vmul.f32 %v1171_v56, %v758_v60 }
0x134f   :  { %v763_v58 = vpop.permute.xlu0 %762 }
0x1350   :  { %v765_v59 = vmul.f32 %v1171_v56, %v763_v58 }
0x1352   :  { %767 = vrot.lane.b32.xlu1 %v765_v59, %s1186_s4 }
0x13c4   :  { %v768_v62 = vpop.permute.xlu1 %767 }
0x13c5   :  { %v770_v63 = vadd.f32 %v768_v62, %v760_v61 }
0x13c7   :  { %1172 = vtanh.f32 %v770_v63 }
0x13d1   :  { %v1173_v0 = vpop.eup %1172 }
0x13d2   :  { %773 = vrot.lane.b32.xlu0 %v1173_v0, %s1185_s19 }
0x1444   :  { %v774_v1 = vpop.permute.xlu0 %773 }
0x1445   :  { %v776_v3 = vmul.f32 %v1171_v56, %v774_v1 }
0x1447   :  { %v782_v4 = vpack.c.bf16 %v776_v3, %v776_v3 }
0x1449   :  { %v784_v5 = vrot.slane %v782_v4, 2 }
0x144b   :  { %785 = vrot.lane.b32.xlu1 %v784_v5, %s1186_s4 }
0x14bd   :  { %v786_v6 = vpop.permute.xlu1 %785 }
0x14be   :  { %1091 = vmatmul.mubr.msk.bf16.vlgmr.msra.gmra.mrb[16].mxu0 %vm145_vm4, %v786_v6 }
0x1591   :  { %v824_v8 = vpop.f32.mrb[16].mxu0 }
0x1592   :  { %v831_v9 = vrot.slane %v824_v8, 2  ;;  %v1092_v10 = vpop.f32.mrb[17].mxu0 }
0x1593   :  { %v827_v11 = vpop.f32.mrb[18].mxu0 }
0x1594   :  { %v833_v12 = vadd.f32 %v831_v9, %v1297_v28  ;;  %v1093_v13 = vpop.f32.mrb[19].mxu0  ;;  %v842_v28 = vrot.slane %v770_v63, 6 }
0x1596   :  { %1174 = vtanh.f32 %v833_v12  ;;  %v970_v15 = vmul.f32 -1.442695, %v833_v12 }
0x1598   :  { %1176 = vpow2.f32 %v970_v15 }
0x15a0   :  { %v1175_v14 = vpop.eup %1174 }
0x15a1   :  { %846 = vrot.lane.b32.xlu0 %v1175_v14, %s1185_s19 }
0x15a2   :  { %v1177_v16 = vpop.eup %1176 }
0x15a3   :  { %v837_v20 = vadd.f32 1.0, %v1177_v16 }
0x15a5   :  { %1178 = vrcp.f32 %v837_v20 }
0x15af   :  { %v1179_v21 = vpop.eup %1178 }
0x15b0   :  { %v844_v24 = vmul.f32 %v1179_v21, %v842_v28 }
0x1613   :  { %v847_v22 = vpop.permute.xlu0 %846 }
0x1614   :  { %v849_v23 = vmul.f32 %v1179_v21, %v847_v22 }
0x1616   :  { %851 = vrot.lane.b32.xlu1 %v849_v23, %s1186_s4 }
0x161a   :  { %275 = vrot.lane.b32.xlu1 %v1305_v48, %s1186_s4 }
0x161e   :  { %444 = vrot.lane.b32.xlu1 %v1337_v34, %s1186_s4 }
0x1622   :  { %611 = vrot.lane.b32.xlu1 %v1369_v19, %s1186_s4  ;;  %v1116_v19 = vld [vmem:[%s1438_s5] sm:$0xff]  }
0x1623   :  { %1095 = vmatpush3.bf16.msra.mxu1 %v1116_v19 }
0x1624   :  { %1096 = vmatprep.subr.bf16.mxu1 %v1183_v2  ;;  %v971_v2 = vld [vmem:[%s1439_s6] ss:$0 sm:$0xff] }
0x1626   :  { %778 = vrot.lane.b32.xlu1 %v776_v3, %s1186_s4 }
0x1627   :  { %1097 = vmatpush3.bf16.msra.mxu1 %v1117_v17 }
0x1688   :  { %v852_v25 = vpop.permute.xlu1 %851 }
0x1689   :  { %v854_v26 = vadd.f32 %v852_v25, %v844_v24 }
0x168b   :  { %1180 = vtanh.f32 %v854_v26 }
0x168c   :  { %v276_v27 = vpop.permute.xlu1 %275 }
0x168d   :  { %279 = vst.msk [vmem:[#allocation2] sm:$0x3] %vm278_vm5, %v276_v27 }
0x1690   :  { %v445_v29 = vpop.permute.xlu1 %444 }
0x1691   :  { %448 = vst.msk [vmem:[#allocation2] sm:$0x30] %vm447_vm6, %v445_v29 }
0x1694   :  { %v612_v48 = vpop.permute.xlu1 %611 }
0x1695   :  { %v1181_v31 = vpop.eup %1180  ;;  %614 = vst.msk [vmem:[#allocation2 + $0x8] sm:$0x3] %vm278_vm5, %v612_v48 }
0x1696   :  { %857 = vrot.lane.b32.xlu0 %v1181_v31, %s1185_s19 }
0x1698   :  { %v779_v34 = vpop.permute.xlu1 %778 }
0x1699   :  { %781 = vst.msk [vmem:[#allocation2 + $0x8] sm:$0x30] %vm447_vm6, %v779_v34 }
0x169a   :  { %359 = vrot.lane.b32.xlu0 %v1321_v7, %s1186_s4 }
0x169e   :  { %529 = vrot.lane.b32.xlu0 %v1353_v57, %s1186_s4 }
0x16a2   :  { %694 = vrot.lane.b32.xlu0 %v1384_v42, %s1186_s4 }
0x1708   :  { %v858_v32 = vpop.permute.xlu0 %857 }
0x1709   :  { %v860_v7 = vmul.f32 %v1179_v21, %v858_v32 }
0x170b   :  { %862 = vrot.lane.b32.xlu0 %v860_v7, %s1186_s4 }
0x170c   :  { %v360_v57 = vpop.permute.xlu0 %359 }
0x170d   :  { %363 = vst.msk [vmem:[#allocation2] sm:$0xc] %vm362_vm7, %v360_v57 }
0x1710   :  { %v530_v33 = vpop.permute.xlu0 %529 }
0x1711   :  { %533 = vst.msk [vmem:[#allocation2] sm:$0xc0] %vm532_vm8, %v530_v33 }
0x1714   :  { %v695_v35 = vpop.permute.xlu0 %694 }
0x1715   :  { %697 = vst.msk [vmem:[#allocation2 + $0x8] sm:$0xc] %vm362_vm7, %v695_v35 }
0x1718   :  { %v866_v18 = vld [vmem:[#allocation2] sm:$0xff] }
0x177d   :  { %v863_v36 = vpop.permute.xlu0 %862 }
0x177e   :  { %865 = vst.msk [vmem:[#allocation2 + $0x8] sm:$0xc0] %vm532_vm8, %v863_v36 }
0x1785   :  { %v867_v37 = vld [vmem:[#allocation2 + $0x8] sm:$0xff] }
0x1786   :  { %v868_v38 = vpack.c.bf16 %v867_v37, %v866_v18 }
0x1788   :  { %1099 = vmatmul.mubr.msk.bf16.vlgmr.msra.gmra.mrb[20].mxu1 %vm145_vm4, %v868_v38 }
0x185b   :  { %v929_v39 = vpop.f32.mrb[20].mxu1 }
0x185c   :  { %v930_v40 = vadd.f32 %v971_v2, %v929_v39  ;;  %v1100_v41 = vpop.f32.mrb[21].mxu1 }
0x185d   :  { %v932_v42 = vpop.f32.mrb[22].mxu1 }
0x185e   :  { %937 = vst.msk [vmem:[%s1440_s7] sm:$0xff] %vm936_vm9, %v930_v40  ;;  %v933_v43 = vadd.f32 %v971_v2, %v932_v42  ;;  %v1101_v44 = vpop.f32.mrb[23].mxu1 }
0x1860   :  { %938 = vst.msk [vmem:[%s1440_s7 + $0x8] sm:$0xff] %vm936_vm9, %v933_v43 }

</bundles_post_ra>
